<compile_context>
chip_gen: v5e
topology: v5e:2x2
jax: 0.10.0
libtpu: 0.0.40
codegen_flags: <defaults>
</compile_context>

<pallas_src>
import functools

import jax
import jax.numpy as jnp
from jax.experimental import pallas as pl
from jax.experimental.pallas import tpu as pltpu


def _cdiv(a, b):
    return (a + b - 1) // b


def _round_up(x, m):
    return (x + m - 1) // m * m


# ---------------------------------------------------------------------------
# Kernel: one (tm, tn) output tile, accumulated in-place over the K grid axis.
# ---------------------------------------------------------------------------
def _mm_kernel(a_ref, b_ref, o_ref, *, transpose_b, k_rem, precision):
    """a_ref: (tm, tk); b_ref: (tk, tn) or (tn, tk) if transpose_b;
    o_ref: (tm, tn) fp32, resident across the K grid axis."""
    k = pl.program_id(2)
    nk = pl.num_programs(2)

    a = a_ref[...]
    b = b_ref[...]

    if k_rem:
        # K does not divide tk: the last K block's tail holds unspecified data
        # (no HBM padding was done).  Zero that tail of BOTH operands on the
        # last step only (scalar select -> `limit`, then one compare+select per
        # tile; a few % of a K step, far cheaper than an HBM pad pass).
        limit = jnp.where(k == nk - 1, k_rem, a.shape[1])
        a = jnp.where(
            jax.lax.broadcasted_iota(jnp.int32, a.shape, 1) < limit, a, 0.0)
        b_k_axis = 1 if transpose_b else 0
        b = jnp.where(
            jax.lax.broadcasted_iota(jnp.int32, b.shape, b_k_axis) < limit, b, 0.0)

    if transpose_b:
        # A @ B^T with B laid out (N, K): contract the last dims of both.
        # TODO(synk): if precision is lowered below HIGHEST and M//tm is large,
        # a one-time HBM pre-transpose of B could amortize the per-step XLU
        # transpose; at HIGHEST it is fully hidden under the MXU passes.
        dims = (((1,), (1,)), ((), ()))
    else:
        dims = (((1,), (0,)), ((), ()))

    partial = jax.lax.dot_general(
        a, b,
        dimension_numbers=dims,
        preferred_element_type=jnp.float32,
        # HIGHEST = ~6 bf16 MXU passes (true fp32 products); HIGH = ~3 passes.
        precision=precision,
    )

    @pl.when(k == 0)
    def _():
        o_ref[...] = partial

    @pl.when(k > 0)
    def _():
        o_ref[...] += partial


# ---------------------------------------------------------------------------
# pallas_call wrapper
# ---------------------------------------------------------------------------
@functools.partial(
    jax.jit, static_argnames=("transpose_b", "tm", "tn", "tk", "precision"))
def _pallas_matmul(a, b, *, transpose_b, tm, tn, tk, precision):
    M, K = a.shape
    N = b.shape[0] if transpose_b else b.shape[1]

    grid_m, grid_n, grid_k = _cdiv(M, tm), _cdiv(N, tn), _cdiv(K, tk)
    k_rem = K % tk  # 0 => K divides evenly, no in-kernel masking emitted

    if transpose_b:
        b_spec = pl.BlockSpec((tn, tk), lambda i, j, k: (j, k))
    else:
        b_spec = pl.BlockSpec((tk, tn), lambda i, j, k: (k, j))

    # Scale the scheduling hint by the MXU pass count of the chosen precision.
    passes = {jax.lax.Precision.HIGHEST: 6, jax.lax.Precision.HIGH: 3}.get(
        precision, 1)

    return pl.pallas_call(
        functools.partial(_mm_kernel, transpose_b=transpose_b, k_rem=k_rem,
                          precision=precision),
        out_shape=jax.ShapeDtypeStruct((M, N), jnp.float32),
        grid_spec=pltpu.PrefetchScalarGridSpec(
            num_scalar_prefetch=0,
            grid=(grid_m, grid_n, grid_k),          # K (reduction) innermost
            in_specs=[
                pl.BlockSpec((tm, tk), lambda i, j, k: (i, k)),
                b_spec,
            ],
            out_specs=pl.BlockSpec((tm, tn), lambda i, j, k: (i, j)),
        ),
        compiler_params=pltpu.CompilerParams(
            dimension_semantics=("parallel", "parallel", "arbitrary"),
            # Max working set (512/512/1024 fp32 tiles, double-buffered) is
            # ~10 MiB; 32 MiB gives headroom on all chips and stays well under
            # v7x's 64 MiB physical VMEM.
            vmem_limit_bytes=32 * 1024 * 1024,
        ),
        cost_estimate=pl.CostEstimate(
            flops=2 * M * N * K * passes,
            transcendentals=0,
            # A is re-read grid_n times, B grid_m times, output written once.
            bytes_accessed=4 * (M * K * grid_n + K * N * grid_m + M * N),
        ),
    )(a, b)


# ---------------------------------------------------------------------------
# Tile selection
# ---------------------------------------------------------------------------
_TM_CANDIDATES = (512, 256, 128)
_TN_CANDIDATES = (512, 256, 128)
_TK_CANDIDATES = (1024, 512, 256, 128)
_MAX_EDGE_WASTE = 0.10


def _pick_tile(dim, candidates, align):
    smallest = candidates[-1]
    if dim <= smallest:
        # One exactly-covering, alignment-rounded block (cdiv grid masks edges).
        return min(smallest, _round_up(dim, align))
    # Largest candidate whose edge-block waste stays under the budget.
    for t in candidates:
        if (_cdiv(dim, t) * t - dim) / dim <= _MAX_EDGE_WASTE:
            return t
    # Otherwise minimize the total padded extent (ties -> larger tile).
    return min(candidates, key=lambda t: (_cdiv(dim, t) * t, -t))


# ---------------------------------------------------------------------------
# Public entry point (equivalent to TrainiumMatMulFP32.forward)
# ---------------------------------------------------------------------------
def trainium_matmul_fp32(matrix_a, matrix_b, *, transpose_b=False,
                         precision=jax.lax.Precision.HIGHEST):
    """JAX/Pallas equivalent of TrainiumMatMulFP32.forward.

    matrix_a: (M, K); matrix_b: (K, N), or (N, K) when transpose_b=True.
    Returns (M, N) float32.  `precision=HIGHEST` (default) keeps the full FP32
    contract; `precision=HIGH` trades ~1e-6 relative error for ~2x throughput.
    """
    a = jnp.asarray(matrix_a, dtype=jnp.float32)
    b = jnp.asarray(matrix_b, dtype=jnp.float32)

    M, K = a.shape
    if transpose_b:
        N, K2 = b.shape
    else:
        K2, N = b.shape
    if K != K2:
        raise ValueError(
            f"Incompatible matrix dimensions: {matrix_a.shape} and {matrix_b.shape}")

    tm = _pick_tile(M, _TM_CANDIDATES, 8)
    tn = _pick_tile(N, _TN_CANDIDATES, 128)
    tk = _pick_tile(K, _TK_CANDIDATES, 128)

    # v7x megacore / megacore sharding: if the parallel (M, N) grid would be a
    # single block for a non-trivial problem, halve the M tile so both
    # TensorCores get an output tile.
    if _cdiv(M, tm) * _cdiv(N, tn) == 1 and M >= 256:
        tm = max(8, _round_up(_cdiv(tm, 2), 8))

    return _pallas_matmul(a, b, transpose_b=transpose_b, tm=tm, tn=tn, tk=tk,
                          precision=precision)


# ---------------------------------------------------------------------------
# Self-test
# ---------------------------------------------------------------------------
if __name__ == "__main__":
    key = jax.random.PRNGKey(0)
    k_a, k_b, k_c, k_d, k_e, k_f = jax.random.split(key, 6)

    # 1) Small, unaligned shapes; transpose_b=True (B given as (N, K)).
    #    Exercises edge-masked M/N blocks and the in-kernel K mask.
    M, K, N = 24, 40, 36
    a = jax.random.normal(k_a, (M, K), dtype=jnp.float32)
    bt = jax.random.normal(k_b, (N, K), dtype=jnp.float32)
    out = jax.block_until_ready(trainium_matmul_fp32(a, bt, transpose_b=True))
    ref = a @ bt.T
    assert out.shape == (M, N)
    assert jnp.allclose(out, ref, atol=1e-4, rtol=1e-4), "case 1 mismatch"

    # 2) Same shapes, transpose_b=False path.
    b = jnp.swapaxes(bt, 0, 1)
    out2 = jax.block_until_ready(trainium_matmul_fp32(a, b, transpose_b=False))
    assert jnp.allclose(out2, a @ b, atol=1e-4, rtol=1e-4), "case 2 mismatch"

    # 3) Unaligned medium shapes: multiple K grid steps with resident
    #    accumulation and last-step K masking (no HBM padding anywhere).
    M2, K2, N2 = 192, 1088, 256
    a2 = jax.random.normal(k_c, (M2, K2), dtype=jnp.float32)
    b2 = jax.random.normal(k_d, (K2, N2), dtype=jnp.float32)
    out3 = jax.block_until_ready(trainium_matmul_fp32(a2, b2))
    ref3 = jnp.dot(a2, b2, precision=jax.lax.Precision.HIGHEST)
    assert jnp.allclose(out3, ref3, atol=1e-3, rtol=1e-4), "case 3 mismatch"

    # 4) Aligned square shape: triggers the megacore tile split and exercises
    #    the faster Precision.HIGH (bf16_3x) mode.
    M3 = N3 = K3 = 512
    a3 = jax.random.normal(k_e, (M3, K3), dtype=jnp.float32)
    b3 = jax.random.normal(k_f, (K3, N3), dtype=jnp.float32)
    out4 = jax.block_until_ready(
        trainium_matmul_fp32(a3, b3, precision=jax.lax.Precision.HIGH))
    ref4 = jnp.dot(a3, b3, precision=jax.lax.Precision.HIGHEST)
    assert jnp.allclose(out4, ref4, atol=5e-2, rtol=1e-3), "case 4 mismatch"

    print("KERNEL_OK")
</pallas_src>

<mosaic_0001>
module attributes {stable_mosaic.version = 11 : i64} {
  func.func @_mm_kernel(%arg0: i32, %arg1: i32, %arg2: i32, %arg3: memref<24x128xf32, #tpu.memory_space<vmem>>, %arg4: memref<128x128xf32, #tpu.memory_space<vmem>>, %arg5: memref<24x128xf32, #tpu.memory_space<vmem>>) attributes {dimension_semantics = [#tpu.dimension_semantics<parallel>, #tpu.dimension_semantics<parallel>, #tpu.dimension_semantics<arbitrary>], iteration_bounds = array<i64: 1, 1, 1>, scalar_prefetch = 0 : i64, scratch_operands = 0 : i64, tpu.core_type = #tpu.core_type<tc>, window_params = [{transform_indices = @transform_0, window_bounds = array<i64: 24, 128>}, {transform_indices = @transform_1, window_bounds = array<i64: 128, 128>}, {transform_indices = @transform_2, window_bounds = array<i64: 24, 128>}]} {
    %c0 = arith.constant 0 : index
    %c0_0 = arith.constant 0 : index
    %0 = vector.load %arg3[%c0, %c0_0] : memref<24x128xf32, #tpu.memory_space<vmem>>, vector<24x128xf32>
    %c0_1 = arith.constant 0 : index
    %c0_2 = arith.constant 0 : index
    %1 = vector.load %arg4[%c0_1, %c0_2] : memref<128x128xf32, #tpu.memory_space<vmem>>, vector<128x128xf32>
    %c0_i32 = arith.constant 0 : i32
    %2 = arith.cmpi eq, %arg2, %c0_i32 : i32
    %c40_i32 = arith.constant 40 : i32
    %c128_i32 = arith.constant 128 : i32
    %3 = arith.select %2, %c40_i32, %c128_i32 : i32
    %4 = tpu.iota {dimensions = array<i32: 1>} : vector<24x128xi32>
    %5 = vector.broadcast %3 : i32 to vector<24x128xi32>
    %6 = arith.cmpi slt, %4, %5 : vector<24x128xi32>
    %cst = arith.constant 0.000000e+00 : f32
    %7 = vector.broadcast %cst : f32 to vector<24x128xf32>
    %8 = arith.select %6, %0, %7 : vector<24x128xi1>, vector<24x128xf32>
    %9 = tpu.iota {dimensions = array<i32: 1>} : vector<128x128xi32>
    %10 = vector.broadcast %3 : i32 to vector<128x128xi32>
    %11 = arith.cmpi slt, %9, %10 : vector<128x128xi32>
    %cst_3 = arith.constant 0.000000e+00 : f32
    %12 = vector.broadcast %cst_3 : f32 to vector<128x128xf32>
    %13 = arith.select %11, %1, %12 : vector<128x128xi1>, vector<128x128xf32>
    %cst_4 = arith.constant dense<0.000000e+00> : vector<24x128xf32>
    %14 = tpu.matmul %8, %13, %cst_4 {dimension_numbers = #tpu.dot_dimension_numbers<[1], [1], [0], [0], [0, 0, 1, 0], [], []>, precision = #tpu.contract_precision<fp32>} : vector<24x128xf32>, vector<128x128xf32>, vector<24x128xf32> -> vector<24x128xf32>
    %c0_i32_5 = arith.constant 0 : i32
    %15 = arith.cmpi eq, %arg2, %c0_i32_5 : i32
    %16 = arith.extui %15 : i1 to i32
    %c0_i32_6 = arith.constant 0 : i32
    %17 = arith.cmpi ne, %16, %c0_i32_6 : i32
    scf.if %17 {
      %c0_9 = arith.constant 0 : index
      %c0_10 = arith.constant 0 : index
      %21 = vector.load %arg5[%c0_9, %c0_10] : memref<24x128xf32, #tpu.memory_space<vmem>>, vector<24x128xf32>
      tpu.vector_store %arg5[%c0_9, %c0_10], %14 {strides = array<i32>} : memref<24x128xf32, #tpu.memory_space<vmem>>, vector<24x128xf32>,
    } else {
    }
    %c0_i32_7 = arith.constant 0 : i32
    %18 = arith.cmpi sgt, %arg2, %c0_i32_7 : i32
    %19 = arith.extui %18 : i1 to i32
    %c0_i32_8 = arith.constant 0 : i32
    %20 = arith.cmpi ne, %19, %c0_i32_8 : i32
    scf.if %20 {
      %c0_9 = arith.constant 0 : index
      %c0_10 = arith.constant 0 : index
      %21 = vector.load %arg5[%c0_9, %c0_10] : memref<24x128xf32, #tpu.memory_space<vmem>>, vector<24x128xf32>
      %22 = arith.addf %21, %14 : vector<24x128xf32>
      %c0_11 = arith.constant 0 : index
      %c0_12 = arith.constant 0 : index
      %23 = vector.load %arg5[%c0_11, %c0_12] : memref<24x128xf32, #tpu.memory_space<vmem>>, vector<24x128xf32>
      tpu.vector_store %arg5[%c0_11, %c0_12], %22 {strides = array<i32>} : memref<24x128xf32, #tpu.memory_space<vmem>>, vector<24x128xf32>,
    } else {
    }
    return
  }
  func.func @transform_0(%arg0: i32, %arg1: i32, %arg2: i32) -> (i32, i32) {
    %c0_i32 = arith.constant 0 : i32
    return %arg0, %arg2 : i32, i32
  }
  func.func @transform_1(%arg0: i32, %arg1: i32, %arg2: i32) -> (i32, i32) {
    %c0_i32 = arith.constant 0 : i32
    return %arg1, %arg2 : i32, i32
  }
  func.func @transform_2(%arg0: i32, %arg1: i32, %arg2: i32) -> (i32, i32) {
    %c0_i32 = arith.constant 0 : i32
    return %arg0, %arg1 : i32, i32
  }
}

</mosaic_0001>

<bundles_post_ra>
// kernel: _pallas_matmul.1
= control target key start
LH: loop header
LB: loop body
LE: loop exit
PB: predicated region body
PF: predicated region fallthrough
CT: control target
= control target key end

     0   :  { %7 = vsyncpa [#allocation3], 0  ;;  %s934_s0 = inlined_call_operand.hbm [shape: f32[24,40], index: 0, kind: input, shape index: {}]   ;;  %s935_s1 = inlined_call_operand.hbm [shape: f32[36,40], index: 1, kind: input, shape index: {}]   ;;  %s936_s2 = inlined_call_operand.hbm [shape: f32[24,36], index: 2, kind: output, shape index: {}]  }
   0x1   :  { %8 = vsyncpa [#allocation6], 0 }
   0x2   :  { %9 = vsyncpa [#allocation4], 0  ;;  %s14_s11 = sshll.u32 %s934_s0, 4  ;;  %s645_s12 = smov [#allocation2]   ;;  %s15_s11 = int_to_ptr.hbm [resolvable:$true] %s14_s11 }
   0x3   :  { %s16_s13 = sshll.u32 %s645_s12, 4  ;;  %s646_s14 = smov 128   ;;  %s17_s13 = int_to_ptr.vmem [resolvable:$true] %s16_s13 }
   0x4   :  { %s647_s15 = smov 8  }
   0x5   :  { %22 = dma.hbm_to_vmem [thread:$0]  %s15_s11, 384, %s17_s13, [#allocation3], %s646_s14, %s646_s14, %s647_s15  }
   0x6   :  { %26 = vsyncadd [#allocation6], 1408  ;;  %s27_s18 = sshll.u32 %s935_s1, 4  ;;  %s648_s19 = smov [#allocation5]   ;;  %s28_s18 = int_to_ptr.hbm [resolvable:$true] %s27_s18 }
   0x7   :  { %s29_s20 = sshll.u32 %s648_s19, 4  ;;  %s30_s20 = int_to_ptr.vmem [resolvable:$true] %s29_s20 }
   0x8   :  { %35 = dma.hbm_to_vmem [thread:$0]  %s28_s18, 640, %s30_s20, [#allocation6], %s646_s14, %s646_s14, %s647_s15  }
   0x9   :  { %639 = dma.done.wait [#allocation3], 384  }
   0xa   :  { %640 = vsyncadd [#allocation3], 4294966912 }
   0xb   :  { %641 = dma.done.wait [#allocation6], 2048  }
   0xc   :  { %642 = vsyncadd [#allocation6], 4294965248  ;;  %v65_v0 = vlaneseq  ;;  %v62_v2 = vld [vmem:[#allocation5 + $0x78] sm:$0xff]  ;;  %v61_v3 = vld [vmem:[#allocation5 + $0x70] sm:$0xff]  ;;  %s649_s0 = smov [#allocation7]   ;;  %s516_s23 = sshll.u32 %s936_s2, 4  ;;  %s517_s23 = int_to_ptr.hbm [resolvable:$true] %s516_s23 }
   0xd   :  { %v60_v4 = vld [vmem:[#allocation5 + $0x68] sm:$0xff]  ;;  %v59_v8 = vld [vmem:[#allocation5 + $0x60] sm:$0xff]  ;;  %v58_v9 = vld [vmem:[#allocation5 + $0x58] sm:$0xff]  ;;  %s514_s1 = sshll.u32 %s649_s0, 4  ;;  %s515_s1 = int_to_ptr.vmem [resolvable:$true] %s514_s1 }
   0xe   :  { %v677_v1 = vand.u32 127, %v65_v0  ;;  %v57_v19 = vld [vmem:[#allocation5 + $0x50] sm:$0xff]  ;;  %v56_v28 = vld [vmem:[#allocation5 + $0x48] sm:$0xff]  ;;  %v55_v36 = vld [vmem:[#allocation5 + $0x40] sm:$0xff] }
   0xf   :  { %v54_v43 = vld [vmem:[#allocation5 + $0x38] sm:$0xff]  ;;  %v53_v50 = vld [vmem:[#allocation5 + $0x30] sm:$0xff]  ;;  %v52_v56 = vld [vmem:[#allocation5 + $0x28] sm:$0xff] }
  0x10   :  { %vm68_vm0 = vcmp.lt.s32.totalorder %v677_v1, 40  ;;  %v51_v0 = vld [vmem:[#allocation5 + $0x20] sm:$0xff] }
  0x11   :  { %v87_v5 = vsel %vm68_vm0, %v62_v2, 0.0  ;;  %v86_v6 = vsel %vm68_vm0, %v61_v3, 0.0  ;;  %v85_v7 = vsel %vm68_vm0, %v60_v4, 0.0  ;;  %v84_v13 = vsel %vm68_vm0, %v59_v8, 0.0  ;;  %v50_v8 = vld [vmem:[#allocation5 + $0x18] sm:$0xff] }
  0x12   :  { %v686_v10 = vand.u32 4294901760, %v87_v5  ;;  %v688_v11 = vand.u32 4294901760, %v86_v6  ;;  %v690_v12 = vand.u32 4294901760, %v85_v7  ;;  %v694_v14 = vand.u32 4294901760, %v84_v13 }
  0x13   :  { %v83_v18 = vsel %vm68_vm0, %v58_v9, 0.0  ;;  %v82_v23 = vsel %vm68_vm0, %v57_v19, 0.0  ;;  %v81_v31 = vsel %vm68_vm0, %v56_v28, 0.0  ;;  %v80_v38 = vsel %vm68_vm0, %v55_v36, 0.0  ;;  %v49_v19 = vld [vmem:[#allocation5 + $0x10] sm:$0xff] }
  0x14   :  { %89 = vmatpush.xpose.msra.mxu0 %v686_v10  ;;  %v146_v15 = vsub.f32 %v87_v5, %v686_v10  ;;  %319 = vmatpush.xpose.msra.mxu3 %v686_v10  ;;  %v152_v16 = vsub.f32 %v86_v6, %v688_v11  ;;  %v158_v17 = vsub.f32 %v85_v7, %v690_v12  ;;  %v707_v22 = vand.u32 4294901760, %v83_v18 }
  0x15   :  { %v164_v26 = vsub.f32 %v84_v13, %v694_v14  ;;  %v718_v30 = vand.u32 4294901760, %v82_v23  ;;  %v728_v37 = vand.u32 4294901760, %v81_v31  ;;  %v738_v44 = vand.u32 4294901760, %v80_v38 }
  0x16   :  { %256 = vmatpush.xpose.msra.mxu2 %v146_v15  ;;  %v703_v20 = vand.u32 4294901760, %v146_v15  ;;  %v705_v21 = vand.u32 4294901760, %v152_v16  ;;  %v716_v27 = vand.u32 4294901760, %v158_v17  ;;  %v170_v34 = vsub.f32 %v83_v18, %v707_v22 }
  0x17   :  { %v725_v35 = vand.u32 4294901760, %v164_v26  ;;  %v176_v41 = vsub.f32 %v82_v23, %v718_v30  ;;  %v182_v47 = vsub.f32 %v81_v31, %v728_v37  ;;  %v79_v49 = vsel %vm68_vm0, %v54_v43, 0.0  ;;  %v48_v31 = vld [vmem:[#allocation5 + $0x8] sm:$0xff] }
  0x18   :  { %91 = vmatpush.xpose.msra.mxu0 %v688_v11  ;;  %v148_v24 = vsub.f32 %v146_v15, %v703_v20  ;;  %321 = vmatpush.xpose.msra.mxu3 %v688_v11  ;;  %v154_v25 = vsub.f32 %v152_v16, %v705_v21  ;;  %v160_v33 = vsub.f32 %v158_v17, %v716_v27  ;;  %v735_v42 = vand.u32 4294901760, %v170_v34 }
  0x19   :  { %v166_v40 = vsub.f32 %v164_v26, %v725_v35  ;;  %v743_v48 = vand.u32 4294901760, %v176_v41  ;;  %v188_v51 = vsub.f32 %v80_v38, %v738_v44  ;;  %v751_v54 = vand.u32 4294901760, %v79_v49 }
  0x1a   :  { %259 = vmatpush.xpose.msra.mxu2 %v152_v16  ;;  %v149_v29 = vand.u32 4294901760, %v148_v24  ;;  %v155_v32 = vand.u32 4294901760, %v154_v25  ;;  %v161_v39 = vand.u32 4294901760, %v160_v33  ;;  %v172_v46 = vsub.f32 %v170_v34, %v735_v42 }
  0x1b   :  { %v167_v45 = vand.u32 4294901760, %v166_v40  ;;  %v178_v53 = vsub.f32 %v176_v41, %v743_v48  ;;  %v753_v55 = vand.u32 4294901760, %v182_v47  ;;  %v78_v57 = vsel %vm68_vm0, %v53_v50, 0.0  ;;  %v47_v40 = vld [vmem:[#allocation5] sm:$0xff] }
  0x1c   :  { %93 = vmatpush.xpose.msra.mxu0 %v690_v12  ;;  %150 = vmatpush.xpose.msra.mxu1 %v149_v29  ;;  %v173_v52 = vand.u32 4294901760, %v172_v46  ;;  %v758_v58 = vand.u32 4294901760, %v188_v51  ;;  %v77_v59 = vsel %vm68_vm0, %v52_v56, 0.0  ;;  %v194_v62 = vsub.f32 %v79_v49, %v751_v54 }
  0x1d   :  { %323 = vmatpush.xpose.msra.mxu3 %v690_v12  ;;  %v179_v60 = vand.u32 4294901760, %v178_v53  ;;  %v184_v61 = vsub.f32 %v182_v47, %v753_v55  ;;  %v765_v63 = vand.u32 4294901760, %v78_v57  ;;  %v769_v3 = vand.u32 4294901760, %v77_v59 }
  0x1e   :  { %262 = vmatpush.xpose.msra.mxu2 %v158_v17  ;;  %v190_v2 = vsub.f32 %v188_v51, %v758_v58  ;;  %v773_v6 = vand.u32 4294901760, %v194_v62  ;;  %v76_v7 = vsel %vm68_vm0, %v51_v0, 0.0  ;;  %v75_v18 = vsel %vm68_vm0, %v50_v8, 0.0 }
  0x1f   :  { %v185_v4 = vand.u32 4294901760, %v184_v61  ;;  %v200_v5 = vsub.f32 %v78_v57, %v765_v63  ;;  %v778_v9 = vand.u32 4294901760, %v76_v7  ;;  %v206_v16 = vsub.f32 %v77_v59, %v769_v3 }
  0x20   :  { %95 = vmatpush.xpose.msra.mxu0 %v694_v14  ;;  %156 = vmatpush.xpose.msra.mxu1 %v155_v32  ;;  %v191_v13 = vand.u32 4294901760, %v190_v2  ;;  %v196_v15 = vsub.f32 %v194_v62, %v773_v6  ;;  %v74_v29 = vsel %vm68_vm0, %v49_v19, 0.0  ;;  %v72_v49 = vsel %vm68_vm0, %v47_v40, 0.0 }
  0x21   :  { %325 = vmatpush.xpose.msra.mxu3 %v694_v14  ;;  %v783_v17 = vand.u32 4294901760, %v200_v5  ;;  %v212_v23 = vsub.f32 %v76_v7, %v778_v9  ;;  %v793_v28 = vand.u32 4294901760, %v206_v16  ;;  %v803_v38 = vand.u32 4294901760, %v74_v29 }
  0x22   :  { %265 = vmatpush.xpose.msra.mxu2 %v164_v26  ;;  %v197_v24 = vand.u32 4294901760, %v196_v15  ;;  %v791_v26 = vand.u32 4294901760, %v75_v18  ;;  %v821_v53 = vand.u32 4294901760, %v72_v49 }
  0x23   :  { %v202_v25 = vsub.f32 %v200_v5, %v783_v17  ;;  %v798_v32 = vand.u32 4294901760, %v212_v23 }
  0x24   :  { %97 = vmatpush.xpose.msra.mxu0 %v707_v22  ;;  %162 = vmatpush.xpose.msra.mxu1 %v161_v39  ;;  %v218_v36 = vsub.f32 %v75_v18, %v791_v26  ;;  %v73_v39 = vsel %vm68_vm0, %v48_v31, 0.0 }
  0x25   :  { %327 = vmatpush.xpose.msra.mxu3 %v707_v22  ;;  %v203_v33 = vand.u32 4294901760, %v202_v25  ;;  %v811_v46 = vand.u32 4294901760, %v73_v39 }
  0x26   :  { %268 = vmatpush.xpose.msra.mxu2 %v170_v34  ;;  %v208_v34 = vsub.f32 %v206_v16, %v793_v28 }
  0x28   :  { %99 = vmatpush.xpose.msra.mxu0 %v718_v30  ;;  %168 = vmatpush.xpose.msra.mxu1 %v167_v45  ;;  %v209_v43 = vand.u32 4294901760, %v208_v34  ;;  %v224_v45 = vsub.f32 %v74_v29, %v803_v38  ;;  %v46_v34 = vld [vmem:[#allocation2 + $0x10] sm:$0xff] }
  0x29   :  { %329 = vmatpush.xpose.msra.mxu3 %v718_v30 }
  0x2a   :  { %271 = vmatpush.xpose.msra.mxu2 %v176_v41  ;;  %v214_v41 = vsub.f32 %v212_v23, %v798_v32  ;;  %v823_v56 = vand.u32 4294901760, %v224_v45 }
  0x2c   :  { %101 = vmatpush.xpose.msra.mxu0 %v728_v37  ;;  %174 = vmatpush.xpose.msra.mxu1 %v173_v52  ;;  %v215_v50 = vand.u32 4294901760, %v214_v41  ;;  %v230_v52 = vsub.f32 %v73_v39, %v811_v46  ;;  %v226_v59 = vsub.f32 %v224_v45, %v823_v56 }
  0x2d   :  { %331 = vmatpush.xpose.msra.mxu3 %v728_v37 }
  0x2e   :  { %274 = vmatpush.xpose.msra.mxu2 %v182_v47  ;;  %v813_v47 = vand.u32 4294901760, %v218_v36  ;;  %v829_v61 = vand.u32 4294901760, %v230_v52 }
  0x30   :  { %103 = vmatpush.xpose.msra.mxu0 %v738_v44  ;;  %180 = vmatpush.xpose.msra.mxu1 %v179_v60  ;;  %v236_v60 = vsub.f32 %v72_v49, %v821_v53  ;;  %v232_v0 = vsub.f32 %v230_v52, %v829_v61 }
  0x31   :  { %333 = vmatpush.xpose.msra.mxu3 %v738_v44 }
  0x32   :  { %277 = vmatpush.xpose.msra.mxu2 %v188_v51  ;;  %v220_v51 = vsub.f32 %v218_v36, %v813_v47  ;;  %v834_v2 = vand.u32 4294901760, %v236_v60  ;;  %v233_v8 = vand.u32 4294901760, %v232_v0 }
  0x34   :  { %105 = vmatpush.xpose.msra.mxu0 %v751_v54  ;;  %186 = vmatpush.xpose.msra.mxu1 %v185_v4  ;;  %v221_v57 = vand.u32 4294901760, %v220_v51  ;;  %v44_v4 = vld [vmem:[#allocation2] sm:$0xff] }
  0x35   :  { %335 = vmatpush.xpose.msra.mxu3 %v751_v54 }
  0x36   :  { %280 = vmatpush.xpose.msra.mxu2 %v194_v62  ;;  %v227_v62 = vand.u32 4294901760, %v226_v59 }
  0x38   :  { %107 = vmatpush.xpose.msra.mxu0 %v765_v63  ;;  %192 = vmatpush.xpose.msra.mxu1 %v191_v13  ;;  %v238_v13 = vsub.f32 %v236_v60, %v834_v2 }
  0x39   :  { %337 = vmatpush.xpose.msra.mxu3 %v765_v63 }
  0x3a   :  { %283 = vmatpush.xpose.msra.mxu2 %v200_v5  ;;  %v69_v5 = vsel %vm68_vm0, %v44_v4, 0.0  ;;  %v239_v18 = vand.u32 4294901760, %v238_v13 }
  0x3b   :  { %v839_v7 = vand.u32 4294901760, %v69_v5 }
  0x3c   :  { %109 = vmatpush.xpose.msra.mxu0 %v769_v3  ;;  %198 = vmatpush.xpose.msra.mxu1 %v197_v24 }
  0x3d   :  { %339 = vmatpush.xpose.msra.mxu3 %v769_v3  ;;  %v121_v15 = vsub.f32 %v69_v5, %v839_v7 }
  0x3e   :  { %286 = vmatpush.xpose.msra.mxu2 %v206_v16 }
  0x3f   :  { %v122_v16 = vand.u32 4294901760, %v121_v15 }
  0x40   :  { %111 = vmatpush.xpose.msra.mxu0 %v778_v9  ;;  %204 = vmatpush.xpose.msra.mxu1 %v203_v33 }
  0x41   :  { %341 = vmatpush.xpose.msra.mxu3 %v778_v9  ;;  %v123_v19 = vsub.f32 %v121_v15, %v122_v16 }
  0x42   :  { %289 = vmatpush.xpose.msra.mxu2 %v212_v23  ;;  %v45_v23 = vld [vmem:[#allocation2 + $0x8] sm:$0xff] }
  0x43   :  { %v70_v24 = vsel %vm68_vm0, %v45_v23, 0.0  ;;  %v124_v25 = vand.u32 4294901760, %v123_v19 }
  0x44   :  { %113 = vmatpush.xpose.msra.mxu0 %v791_v26  ;;  %210 = vmatpush.xpose.msra.mxu1 %v209_v43  ;;  %v852_v29 = vand.u32 4294901760, %v70_v24 }
  0x45   :  { %343 = vmatpush.xpose.msra.mxu3 %v791_v26 }
  0x46   :  { %292 = vmatpush.xpose.msra.mxu2 %v218_v36 }
  0x48   :  { %115 = vmatpush.xpose.msra.mxu0 %v803_v38  ;;  %216 = vmatpush.xpose.msra.mxu1 %v215_v50 }
  0x49   :  { %345 = vmatpush.xpose.msra.mxu3 %v803_v38 }
  0x4a   :  { %295 = vmatpush.xpose.msra.mxu2 %v224_v45 }
  0x4c   :  { %117 = vmatpush.xpose.msra.mxu0 %v811_v46  ;;  %222 = vmatpush.xpose.msra.mxu1 %v221_v57 }
  0x4d   :  { %347 = vmatpush.xpose.msra.mxu3 %v811_v46 }
  0x4e   :  { %298 = vmatpush.xpose.msra.mxu2 %v230_v52 }
  0x50   :  { %119 = vmatpush.xpose.msra.mxu0 %v821_v53  ;;  %228 = vmatpush.xpose.msra.mxu1 %v227_v62 }
  0x51   :  { %349 = vmatpush.xpose.msra.mxu3 %v821_v53 }
  0x52   :  { %301 = vmatpush.xpose.msra.mxu2 %v236_v60 }
  0x53   :  { %125 = vmatmul.f32.vlgmr.msra.gmra.mxu0 %v124_v25 }
  0x54   :  { %372 = vmatpush.xpose.msrb.mxu0 %v703_v20  ;;  %234 = vmatpush.xpose.msra.mxu1 %v233_v8 }
  0x55   :  { %546 = vmatpush.xpose.msrb.mxu3 %v686_v10  ;;  %304 = vmatmul.f32.vlgmr.msra.gmra.mxu2 %v121_v15 }
  0x56   :  { %530 = vmatpush.xpose.msrb.mxu2 %v703_v20  ;;  %353 = vmatmul.f32.vlgmr.msra.gmra.mxu3 %v122_v16  ;;  %v129_v20 = vsub.f32 %v70_v24, %v852_v29 }
  0x58   :  { %376 = vmatpush.xpose.msrb.mxu0 %v705_v21  ;;  %240 = vmatpush.xpose.msra.mxu1 %v239_v18  ;;  %v130_v31 = vand.u32 4294901760, %v129_v20 }
  0x59   :  { %547 = vmatpush.xpose.msrb.mxu3 %v688_v11 }
  0x5a   :  { %531 = vmatpush.xpose.msrb.mxu2 %v705_v21  ;;  %v131_v33 = vsub.f32 %v129_v20, %v130_v31  ;;  %v71_v21 = vsel %vm68_vm0, %v46_v34, 0.0 }
  0x5b   :  { %242 = vmatmul.f32.vlgmr.msra.gmra.mxu1 %v839_v7  ;;  %v866_v36 = vand.u32 4294901760, %v71_v21 }
  0x5c   :  { %380 = vmatpush.xpose.msrb.mxu0 %v716_v27  ;;  %447 = vmatpush.xpose.msrb.mxu1 %v686_v10  ;;  %v132_v10 = vand.u32 4294901760, %v131_v33 }
  0x5d   :  { %548 = vmatpush.xpose.msrb.mxu3 %v690_v12  ;;  %309 = vmatmul.f32.gmra.mxu2 %v129_v20 }
  0x5e   :  { %532 = vmatpush.xpose.msrb.mxu2 %v716_v27  ;;  %359 = vmatmul.f32.gmra.mxu3 %v130_v31  ;;  %v137_v27 = vsub.f32 %v71_v21, %v866_v36 }
  0x5f   :  { %133 = vmatmul.f32.gmra.mxu0 %v132_v10 }
  0x60   :  { %384 = vmatpush.xpose.msrb.mxu0 %v725_v35  ;;  %449 = vmatpush.xpose.msrb.mxu1 %v688_v11  ;;  %v138_v11 = vand.u32 4294901760, %v137_v27 }
  0x61   :  { %549 = vmatpush.xpose.msrb.mxu3 %v694_v14 }
  0x62   :  { %533 = vmatpush.xpose.msrb.mxu2 %v725_v35  ;;  %v139_v1 = vsub.f32 %v137_v27, %v138_v11 }
  0x63   :  { %246 = vmatmul.f32.gmra.mxu1 %v852_v29 }
  0x64   :  { %388 = vmatpush.xpose.msrb.mxu0 %v735_v42  ;;  %451 = vmatpush.xpose.msrb.mxu1 %v690_v12  ;;  %v140_v35 = vand.u32 4294901760, %v139_v1 }
  0x65   :  { %550 = vmatpush.xpose.msrb.mxu3 %v707_v22  ;;  %314 = vmatmul.f32.gmra.mxu2 %v137_v27 }
  0x66   :  { %534 = vmatpush.xpose.msrb.mxu2 %v735_v42  ;;  %365 = vmatmul.f32.gmra.mxu3 %v138_v11 }
  0x67   :  { %141 = vmatmul.f32.gmra.mxu0 %v140_v35 }
  0x68   :  { %392 = vmatpush.xpose.msrb.mxu0 %v743_v48  ;;  %453 = vmatpush.xpose.msrb.mxu1 %v694_v14 }
  0x69   :  { %551 = vmatpush.xpose.msrb.mxu3 %v718_v30 }
  0x6a   :  { %535 = vmatpush.xpose.msrb.mxu2 %v743_v48 }
  0x6b   :  { %250 = vmatmul.f32.gmra.mxu1 %v866_v36 }
  0x6c   :  { %396 = vmatpush.xpose.msrb.mxu0 %v753_v55  ;;  %455 = vmatpush.xpose.msrb.mxu1 %v707_v22 }
  0x6d   :  { %552 = vmatpush.xpose.msrb.mxu3 %v728_v37 }
  0x6e   :  { %536 = vmatpush.xpose.msrb.mxu2 %v753_v55 }
  0x70   :  { %400 = vmatpush.xpose.msrb.mxu0 %v758_v58  ;;  %457 = vmatpush.xpose.msrb.mxu1 %v718_v30 }
  0x71   :  { %553 = vmatpush.xpose.msrb.mxu3 %v738_v44 }
  0x72   :  { %537 = vmatpush.xpose.msrb.mxu2 %v758_v58 }
  0x74   :  { %404 = vmatpush.xpose.msrb.mxu0 %v773_v6  ;;  %459 = vmatpush.xpose.msrb.mxu1 %v728_v37 }
  0x75   :  { %554 = vmatpush.xpose.msrb.mxu3 %v751_v54 }
  0x76   :  { %538 = vmatpush.xpose.msrb.mxu2 %v773_v6 }
  0x78   :  { %408 = vmatpush.xpose.msrb.mxu0 %v783_v17  ;;  %461 = vmatpush.xpose.msrb.mxu1 %v738_v44 }
  0x79   :  { %555 = vmatpush.xpose.msrb.mxu3 %v765_v63 }
  0x7a   :  { %539 = vmatpush.xpose.msrb.mxu2 %v783_v17 }
  0x7c   :  { %412 = vmatpush.xpose.msrb.mxu0 %v793_v28  ;;  %463 = vmatpush.xpose.msrb.mxu1 %v751_v54 }
  0x7d   :  { %556 = vmatpush.xpose.msrb.mxu3 %v769_v3 }
  0x7e   :  { %540 = vmatpush.xpose.msrb.mxu2 %v793_v28 }
  0x80   :  { %416 = vmatpush.xpose.msrb.mxu0 %v798_v32  ;;  %465 = vmatpush.xpose.msrb.mxu1 %v765_v63 }
  0x81   :  { %557 = vmatpush.xpose.msrb.mxu3 %v778_v9 }
  0x82   :  { %541 = vmatpush.xpose.msrb.mxu2 %v798_v32 }
  0x84   :  { %420 = vmatpush.xpose.msrb.mxu0 %v813_v47  ;;  %467 = vmatpush.xpose.msrb.mxu1 %v769_v3 }
  0x85   :  { %558 = vmatpush.xpose.msrb.mxu3 %v791_v26 }
  0x86   :  { %542 = vmatpush.xpose.msrb.mxu2 %v813_v47 }
  0x88   :  { %424 = vmatpush.xpose.msrb.mxu0 %v823_v56  ;;  %469 = vmatpush.xpose.msrb.mxu1 %v778_v9 }
  0x89   :  { %559 = vmatpush.xpose.msrb.mxu3 %v803_v38 }
  0x8a   :  { %543 = vmatpush.xpose.msrb.mxu2 %v823_v56 }
  0x8c   :  { %428 = vmatpush.xpose.msrb.mxu0 %v829_v61  ;;  %471 = vmatpush.xpose.msrb.mxu1 %v791_v26 }
  0x8d   :  { %560 = vmatpush.xpose.msrb.mxu3 %v811_v46 }
  0x8e   :  { %544 = vmatpush.xpose.msrb.mxu2 %v829_v61 }
  0x90   :  { %432 = vmatpush.xpose.msrb.mxu0 %v834_v2  ;;  %473 = vmatpush.xpose.msrb.mxu1 %v803_v38 }
  0x91   :  { %561 = vmatpush.xpose.msrb.mxu3 %v821_v53 }
  0x92   :  { %545 = vmatpush.xpose.msrb.mxu2 %v834_v2 }
  0x93   :  { %434 = vmatmul.f32.vlgmr.msrb.gmra.mxu0 %v839_v7 }
  0x94   :  { %475 = vmatpush.xpose.msrb.mxu1 %v811_v46  ;;  %483 = vmatmul.f32.vlgmr.msrb.gmra.mxu3 %v852_v29 }
  0x95   :  { %438 = vmatmul.f32.vlgmr.msrb.gmra.mxu2 %v852_v29 }
  0x98   :  { %477 = vmatpush.xpose.msrb.mxu1 %v821_v53 }
  0x9b   :  { %479 = vmatmul.f32.vlgmr.msrb.gmra.mxu1 %v839_v7 }
  0x9c   :  { %487 = vmatmul.f32.gmra.mxu3 %v866_v36 }
  0x9d   :  { %442 = vmatmul.f32.gmra.mxu2 %v866_v36 }
  0xd0   :  { %v126_v12 = vpop.f32.mrf.mxu0 }
  0xd8   :  { %v305_v22 = vpop.f32.mrf.mxu2  ;;  %v243_v30 = vpop.f32.mrf.mxu1 }
  0xd9   :  { %v354_v14 = vpop.f32.mrf.mxu3  ;;  %v244_v55 = vadd.f32 %v243_v30, %v126_v12 }
  0xdb   :  { %v306_v9 = vadd.f32 %v305_v22, %v244_v55 }
  0xdc   :  { %v134_v37 = vpop.f32.mrf.mxu0 }
  0xdd   :  { %v355_v28 = vadd.f32 %v354_v14, %v306_v9 }
  0xe0   :  { %v310_v44 = vpop.f32.mrf.mxu2  ;;  %v247_v48 = vpop.f32.mrf.mxu1 }
  0xe1   :  { %v360_v42 = vpop.f32.mrf.mxu3  ;;  %v248_v3 = vadd.f32 %v247_v48, %v134_v37 }
  0xe3   :  { %v311_v17 = vadd.f32 %v310_v44, %v248_v3 }
  0xe4   :  { %v142_v54 = vpop.f32.mrf.mxu0 }
  0xe5   :  { %v361_v32 = vadd.f32 %v360_v42, %v311_v17 }
  0xe8   :  { %v315_v63 = vpop.f32.mrf.mxu2  ;;  %v251_v6 = vpop.f32.mrf.mxu1 }
  0xe9   :  { %v366_v58 = vpop.f32.mrf.mxu3  ;;  %v252_v38 = vadd.f32 %v251_v6, %v142_v54 }
  0xeb   :  { %v316_v47 = vadd.f32 %v315_v63, %v252_v38 }
  0xed   :  { %v367_v50 = vadd.f32 %v366_v58, %v316_v47 }
 0x110   :  { %v435_v26 = vpop.f32.mrf.mxu0 }
 0x111   :  { %v436_v39 = vadd.f32 %v435_v26, %v355_v28 }
 0x117   :  { %v484_v40 = vpop.f32.mrf.mxu3 }
 0x118   :  { %v439_v41 = vpop.f32.mrf.mxu2  ;;  %v480_v43 = vpop.f32.mrf.mxu1 }
 0x119   :  { %v440_v45 = vadd.f32 %v439_v41, %v361_v32  ;;  %v481_v46 = vadd.f32 %v480_v43, %v436_v39 }
 0x11b   :  { %494 = vst [vmem:[#allocation7] sm:$0xff] %v481_v46  ;;  %v485_v49 = vadd.f32 %v484_v40, %v440_v45 }
 0x11d   :  { %495 = vst [vmem:[#allocation7 + $0x8] sm:$0xff] %v485_v49 }
 0x11f   :  { %v488_v52 = vpop.f32.mrf.mxu3 }
 0x120   :  { %v443_v51 = vpop.f32.mrf.mxu2 }
 0x121   :  { %v444_v53 = vadd.f32 %v443_v51, %v367_v50 }
 0x123   :  { %v489_v56 = vadd.f32 %v488_v52, %v444_v53 }
 0x125   :  { %496 = vst [vmem:[#allocation7 + $0x10] sm:$0xff] %v489_v56 }
 0x126   :  { %522 = dma.vmem_to_hbm [thread:$0]  %s515_s1, 384, %s517_s23, [#allocation4], %s646_s14, %s646_s14, %s647_s15  }
 0x127   :  { %643 = dma.done.wait [#allocation4], 384  }
 0x128   :  { %644 = vsyncadd [#allocation4], 4294966912 }
 0x129   :  { %527 = vsyncpa [#allocation3], 1 }
 0x12a   :  { %528 = vsyncpa [#allocation6], 1 }
 0x12b   :  { %529 = vsyncpa [#allocation4], 1 }

</bundles_post_ra>
